<compile_context>
chip_gen: v7x
topology: tpu7x:2x2x1
jax: 0.10.0
libtpu: 0.0.40
codegen_flags: <defaults>
</compile_context>

<pallas_src>
import jax
import jax.numpy as jnp
from jax.experimental import pallas as pl
from jax.experimental.pallas import tpu as pltpu

LANE = 128


def _round_up(x, m):
    return (x + m - 1) // m * m


# ----------------------------------------------------------------------------
# Kernel (one grid step == one ODL forward step)
# ----------------------------------------------------------------------------
def make_kernel(L, mask_row):
    """L = max_num_hidden_layers (static). mask_row = row of the per-step tile
    that carries the pre-scaled dropout mask. Only Python ints are captured."""

    def kernel(xa_ref, w_ref, f_ref, g_ref, out_ref):
        xa = xa_ref[0]                                   # (b_rows, 128) f32
        f = f_ref[...]                                   # (f_rows, 128) f32 biases
        mask_scaled = xa[mask_row:mask_row + 1, :]       # (1, 128): mask * 1/(1-p)

        # ---- hidden layer 0: cat(aux, X) -> n_aux_neuron, relu, dropout -----
        h = jnp.dot(xa.astype(jnp.bfloat16), w_ref[0],
                    preferred_element_type=jnp.float32) + f[0:1, :]
        h = jnp.maximum(h, 0.0) * mask_scaled            # f32 elementwise

        # ---- hidden layers 1..L-1, with fused classifier-head accumulation --
        # w_ref[L + j] is the block-diagonal classifier block of head j, so the
        # per-head logits land directly in lanes [j*nc, (j+1)*nc): no concat.
        logits = None
        for i in range(1, L):
            h = jnp.maximum(
                jnp.dot(h.astype(jnp.bfloat16), w_ref[i],
                        preferred_element_type=jnp.float32) + f[i:i + 1, :],
                0.0)
            d = jnp.dot(h.astype(jnp.bfloat16), w_ref[L + i - 1],
                        preferred_element_type=jnp.float32)
            logits = d if logits is None else logits + d
        logits = logits + f[L:L + 1, :]                  # concatenated output biases

        # ---- fused group-wise softmax over each head's nc lanes --------------
        # One row max (overflow safety), ONE exp, group sums via one f32 matmul
        # against the precomputed block-diagonal ones matrix, one reciprocal.
        m = jnp.max(logits, axis=1, keepdims=True)       # padded lanes are 0 -> safe
        e = jnp.exp(logits - m)
        denom = jnp.dot(e, g_ref[...], preferred_element_type=jnp.float32)
        denom = jnp.maximum(denom, 1e-30)                # no NaN even on underflow
        out_ref[0] = e * pl.reciprocal(denom, approx=False)   # lane-dense store

    return kernel


# ----------------------------------------------------------------------------
# One-time host-side packing of parameters into resident, lane-aligned slabs
# ----------------------------------------------------------------------------
def pack_params(params, cfg):
    L = cfg["max_num_hidden_layers"]
    qtd = cfg["qtd_neuron_per_hidden_layer"]
    nc = cfg["n_classes"]
    n_aux_neuron = cfg["n_neuron_aux_layer"]
    n_heads = L - 1
    K0 = cfg["features_size"] + cfg["n_aux_feat"]
    assert max(K0, n_aux_neuron, qtd, n_heads * nc) <= LANE

    # bf16 weight slab: blocks 0..L-1 hidden layers, blocks L..L+n_heads-1 heads.
    nblk = L + n_heads
    wslab = jnp.zeros((nblk, LANE, LANE), jnp.float32)
    for i, w in enumerate(params["hw"]):                         # (in, out) layout
        wslab = wslab.at[i, :w.shape[0], :w.shape[1]].set(w)
    for j, w in enumerate(params["ow"]):                         # block-diagonal heads
        wslab = wslab.at[L + j, :qtd, j * nc:(j + 1) * nc].set(w)
    wslab = wslab.astype(jnp.bfloat16)

    # f32 bias slab: row i = bias of hidden layer i, row L = concat output biases.
    f_rows = _round_up(L + 1, 8)
    fslab = jnp.zeros((f_rows, LANE), jnp.float32)
    for i, b in enumerate(params["hb"]):
        fslab = fslab.at[i, :b.shape[-1]].set(b.reshape(-1))
    ob_cat = jnp.concatenate([b.reshape(-1) for b in params["ob"]])
    fslab = fslab.at[L, :n_heads * nc].set(ob_cat)

    # Block-diagonal ones matrix for the group-sum softmax matmul.
    hn = n_heads * nc
    lane = jnp.arange(LANE)
    same_group = ((lane[:, None] // nc == lane[None, :] // nc)
                  & (lane[:, None] < hn) & (lane[None, :] < hn))
    pad_diag = (lane[:, None] == lane[None, :]) & (lane[:, None] >= hn)
    gmat = (same_group | pad_diag).astype(jnp.float32)

    return {"wslab": wslab, "fslab": fslab, "gmat": gmat}


# ----------------------------------------------------------------------------
# Wrappers
# ----------------------------------------------------------------------------
def auxdrop_forward_steps(packed, X_steps, aux_steps, aux_mask_steps,
                          dropout_masks, cfg):
    """Forward for S ODL steps in one pallas_call.
    X_steps (S,B,feat), aux_steps (S,B,n_aux), dropout_masks (S,n_aux_neuron).
    Returns (S, L-1, B, n_classes)."""
    del aux_mask_steps  # unused by this variant's forward(), same as the reference
    L = cfg["max_num_hidden_layers"]
    nc = cfg["n_classes"]
    n_aux_neuron = cfg["n_neuron_aux_layer"]
    n_aux = cfg["n_aux_feat"]
    feat = cfg["features_size"]
    n_heads = L - 1
    S, batch, _ = X_steps.shape
    K0 = n_aux + feat
    inv_keep = 1.0 / (1.0 - cfg["dropout_p"])

    # Per-step activation tile: rows [0, batch) = cat(aux, X); row `batch`
    # carries the scaled dropout mask (rows never mix; padding rows are sliced
    # away at the end). batch padded to >=8 sublanes, lanes padded to 128.
    mask_row = batch
    b_rows = _round_up(batch + 1, 8)
    xa = jnp.zeros((S, b_rows, LANE), jnp.float32)
    xa = xa.at[:, :batch, :n_aux].set(aux_steps)
    xa = xa.at[:, :batch, n_aux:K0].set(X_steps)
    xa = xa.at[:, mask_row, :n_aux_neuron].set(dropout_masks * inv_keep)

    wslab, fslab, gmat = packed["wslab"], packed["fslab"], packed["gmat"]
    nblk, f_rows = wslab.shape[0], fslab.shape[0]

    out = pl.pallas_call(
        make_kernel(L, mask_row),
        out_shape=jax.ShapeDtypeStruct((S, b_rows, LANE), jnp.float32),
        grid=(S,),
        in_specs=[
            pl.BlockSpec((1, b_rows, LANE), lambda s: (s, 0, 0)),       # per-step acts
            pl.BlockSpec((nblk, LANE, LANE), lambda s: (0, 0, 0)),      # resident weights
            pl.BlockSpec((f_rows, LANE), lambda s: (0, 0)),             # resident biases
            pl.BlockSpec((LANE, LANE), lambda s: (0, 0)),               # resident group mat
        ],
        out_specs=pl.BlockSpec((1, b_rows, LANE), lambda s: (s, 0, 0)),
        compiler_params=pltpu.CompilerParams(
            # Forward-only evaluation: steps independent -> shard across v7x's
            # two TensorCores. Use ("arbitrary",) for truly sequential ODL steps.
            dimension_semantics=("parallel",),
        ),
    )(xa, wslab, fslab, gmat)

    out = out[:, :batch, :n_heads * nc]                      # strip padding
    return out.reshape(S, batch, n_heads, nc).transpose(0, 2, 1, 3)


def auxdrop_forward(packed, X, aux_feat, aux_mask, dropout_mask, cfg):
    """Single-step forward, mirroring the torch module's forward(X, aux, mask)."""
    out = auxdrop_forward_steps(packed, X[None], aux_feat[None], aux_mask[None],
                                dropout_mask.reshape(1, -1), cfg)
    return out[0]                                            # (L-1, batch, n_classes)


# ----------------------------------------------------------------------------
# Deterministic parameter construction (nn.Linear default init, (in,out) layout)
# ----------------------------------------------------------------------------
def init_params(key, cfg):
    L = cfg["max_num_hidden_layers"]
    qtd = cfg["qtd_neuron_per_hidden_layer"]
    feat = cfg["features_size"]
    n_aux = cfg["n_aux_feat"]
    n_aux_neuron = cfg["n_neuron_aux_layer"]
    nc = cfg["n_classes"]

    def lin(key, in_dim, out_dim):
        k = 1.0 / jnp.sqrt(jnp.float32(in_dim))
        kw, kb = jax.random.split(key)
        w = jax.random.uniform(kw, (in_dim, out_dim), jnp.float32, -k, k)
        b = jax.random.uniform(kb, (1, out_dim), jnp.float32, -k, k)
        return w, b

    keys = jax.random.split(key, L + (L - 1))
    hw, hb = [], []
    for i in range(L):
        if i == 0:
            w, b = lin(keys[i], feat + n_aux, n_aux_neuron)
        elif i == 1:
            w, b = lin(keys[i], n_aux_neuron, qtd)
        else:
            w, b = lin(keys[i], qtd, qtd)
        hw.append(w)
        hb.append(b)

    ow, ob = [], []
    for i in range(L - 1):
        w, b = lin(keys[L + i], qtd, nc)
        ow.append(w)
        ob.append(b)
    return {"hw": hw, "hb": hb, "ow": ow, "ob": ob}


# ----------------------------------------------------------------------------
# Pure-JAX reference (same bf16 matmul operands) for correctness
# ----------------------------------------------------------------------------
def reference_forward(params, X, aux_feat, dropout_mask, cfg):
    L = cfg["max_num_hidden_layers"]
    inv_keep = 1.0 / (1.0 - cfg["dropout_p"])

    def bdot(a, b):
        return jnp.dot(a.astype(jnp.bfloat16), b.astype(jnp.bfloat16),
                       preferred_element_type=jnp.float32)

    xa = jnp.concatenate([aux_feat, X], axis=1)
    h0 = jax.nn.relu(bdot(xa, params["hw"][0]) + params["hb"][0])
    hcs = [h0 * dropout_mask * inv_keep]
    for i in range(1, L):
        hcs.append(jax.nn.relu(bdot(hcs[i - 1], params["hw"][i]) + params["hb"][i]))
    outs = []
    for i in range(L - 1):
        logits = bdot(hcs[i + 1], params["ow"][i]) + params["ob"][i]
        outs.append(jax.nn.softmax(logits, axis=1))
    return jnp.stack(outs)


# ----------------------------------------------------------------------------
if __name__ == "__main__":
    cfg = dict(
        features_size=16,
        max_num_hidden_layers=6,
        qtd_neuron_per_hidden_layer=32,
        n_classes=4,
        aux_layer=3,            # constructor arg; unused in this variant's forward()
        n_neuron_aux_layer=40,
        n_aux_feat=3,
        batch_size=2,
        dropout_p=0.5,
    )
    S = 4                       # ODL steps batched into one pallas_call
    B = cfg["batch_size"]
    L = cfg["max_num_hidden_layers"]

    root = jax.random.PRNGKey(0)
    k_param, k_x, k_aux, k_mask, k_drop = jax.random.split(root, 5)

    params = init_params(k_param, cfg)
    packed = pack_params(params, cfg)   # packed once, reused for every step

    X = jax.random.normal(k_x, (S, B, cfg["features_size"]), jnp.float32)
    aux_feat = jax.random.normal(k_aux, (S, B, cfg["n_aux_feat"]), jnp.float32)
    aux_mask = jax.random.bernoulli(
        k_mask, 0.5, (S, B, cfg["n_aux_feat"])).astype(jnp.float32)
    keep = 1.0 - cfg["dropout_p"]
    dropout_masks = jax.random.bernoulli(
        k_drop, keep, (S, cfg["n_neuron_aux_layer"])).astype(jnp.float32)

    out = auxdrop_forward_steps(packed, X, aux_feat, aux_mask, dropout_masks, cfg)
    out = jax.block_until_ready(out)
    assert out.shape == (S, L - 1, B, cfg["n_classes"])
    assert bool(jnp.all(jnp.isfinite(out))), "non-finite output"

    ref = jnp.stack([
        reference_forward(params, X[s], aux_feat[s], dropout_masks[s:s + 1], cfg)
        for s in range(S)
    ])
    assert jnp.allclose(out, ref, atol=1e-2, rtol=1e-2), "mismatch vs JAX reference"

    # Single-step API, mirroring the torch module's forward()
    single = auxdrop_forward(packed, X[0], aux_feat[0], aux_mask[0],
                             dropout_masks[0], cfg)
    single = jax.block_until_ready(single)
    assert single.shape == (L - 1, B, cfg["n_classes"])
    assert jnp.allclose(single, ref[0], atol=1e-2, rtol=1e-2)

    print("KERNEL_OK")
</pallas_src>

<mosaic_0001>
module attributes {stable_mosaic.version = 11 : i64} {
  func.func @kernel(%arg0: i32, %arg1: memref<1x8x128xf32, #tpu.memory_space<vmem>>, %arg2: memref<11x128x128xbf16, #tpu.memory_space<vmem>>, %arg3: memref<8x128xf32, #tpu.memory_space<vmem>>, %arg4: memref<128x128xf32, #tpu.memory_space<vmem>>, %arg5: memref<1x8x128xf32, #tpu.memory_space<vmem>>) attributes {dimension_semantics = [#tpu.dimension_semantics<parallel>], iteration_bounds = array<i64: 4>, scalar_prefetch = 0 : i64, scratch_operands = 0 : i64, tpu.core_type = #tpu.core_type<tc>, window_params = [{transform_indices = @transform_0, window_bounds = array<i64: 1, 8, 128>}, {pipeline_mode = #tpu.pipeline_mode<synchronous>, transform_indices = @transform_1, window_bounds = array<i64: 11, 128, 128>}, {pipeline_mode = #tpu.pipeline_mode<synchronous>, transform_indices = @transform_2, window_bounds = array<i64: 8, 128>}, {pipeline_mode = #tpu.pipeline_mode<synchronous>, transform_indices = @transform_3, window_bounds = array<i64: 128, 128>}, {transform_indices = @transform_4, window_bounds = array<i64: 1, 8, 128>}]} {
    %c0 = arith.constant 0 : index
    %c0_0 = arith.constant 0 : index
    %c0_1 = arith.constant 0 : index
    %0 = vector.load %arg1[%c0, %c0_0, %c0_1] : memref<1x8x128xf32, #tpu.memory_space<vmem>>, vector<1x8x128xf32>
    %1 = vector.shape_cast %0 : vector<1x8x128xf32> to vector<8x128xf32>
    %c0_2 = arith.constant 0 : index
    %c0_3 = arith.constant 0 : index
    %2 = vector.load %arg3[%c0_2, %c0_3] : memref<8x128xf32, #tpu.memory_space<vmem>>, vector<8x128xf32>
    %3 = vector.extract_strided_slice %1 {offsets = [2, 0], sizes = [1, 128], strides = [1, 1]} : vector<8x128xf32> to vector<1x128xf32>
    %4 = arith.truncf %1 : vector<8x128xf32> to vector<8x128xbf16>
    %c0_4 = arith.constant 0 : index
    %c0_5 = arith.constant 0 : index
    %c0_6 = arith.constant 0 : index
    %5 = vector.load %arg2[%c0_4, %c0_5, %c0_6] : memref<11x128x128xbf16, #tpu.memory_space<vmem>>, vector<1x128x128xbf16>
    %6 = vector.shape_cast %5 : vector<1x128x128xbf16> to vector<128x128xbf16>
    %cst = arith.constant dense<0.000000e+00> : vector<8x128xf32>
    %7 = tpu.matmul %4, %6, %cst {dimension_numbers = #tpu.dot_dimension_numbers<[1], [0], [0], [1], [0, 0, 1, 1], [], []>} : vector<8x128xbf16>, vector<128x128xbf16>, vector<8x128xf32> -> vector<8x128xf32>
    %8 = vector.extract_strided_slice %2 {offsets = [0, 0], sizes = [1, 128], strides = [1, 1]} : vector<8x128xf32> to vector<1x128xf32>
    %9 = vector.broadcast %8 : vector<1x128xf32> to vector<8x128xf32>
    %10 = arith.addf %7, %9 : vector<8x128xf32>
    %cst_7 = arith.constant 0.000000e+00 : f32
    %11 = vector.broadcast %cst_7 : f32 to vector<8x128xf32>
    %12 = arith.maximumf %10, %11 : vector<8x128xf32>
    %13 = vector.broadcast %3 : vector<1x128xf32> to vector<8x128xf32>
    %14 = arith.mulf %12, %13 : vector<8x128xf32>
    %15 = arith.truncf %14 : vector<8x128xf32> to vector<8x128xbf16>
    %c1 = arith.constant 1 : index
    %c0_8 = arith.constant 0 : index
    %c0_9 = arith.constant 0 : index
    %16 = vector.load %arg2[%c1, %c0_8, %c0_9] : memref<11x128x128xbf16, #tpu.memory_space<vmem>>, vector<1x128x128xbf16>
    %17 = vector.shape_cast %16 : vector<1x128x128xbf16> to vector<128x128xbf16>
    %cst_10 = arith.constant dense<0.000000e+00> : vector<8x128xf32>
    %18 = tpu.matmul %15, %17, %cst_10 {dimension_numbers = #tpu.dot_dimension_numbers<[1], [0], [0], [1], [0, 0, 1, 1], [], []>} : vector<8x128xbf16>, vector<128x128xbf16>, vector<8x128xf32> -> vector<8x128xf32>
    %19 = vector.extract_strided_slice %2 {offsets = [1, 0], sizes = [1, 128], strides = [1, 1]} : vector<8x128xf32> to vector<1x128xf32>
    %20 = vector.broadcast %19 : vector<1x128xf32> to vector<8x128xf32>
    %21 = arith.addf %18, %20 : vector<8x128xf32>
    %cst_11 = arith.constant 0.000000e+00 : f32
    %22 = vector.broadcast %cst_11 : f32 to vector<8x128xf32>
    %23 = arith.maximumf %21, %22 : vector<8x128xf32>
    %24 = arith.truncf %23 : vector<8x128xf32> to vector<8x128xbf16>
    %c6 = arith.constant 6 : index
    %c0_12 = arith.constant 0 : index
    %c0_13 = arith.constant 0 : index
    %25 = vector.load %arg2[%c6, %c0_12, %c0_13] : memref<11x128x128xbf16, #tpu.memory_space<vmem>>, vector<1x128x128xbf16>
    %26 = vector.shape_cast %25 : vector<1x128x128xbf16> to vector<128x128xbf16>
    %cst_14 = arith.constant dense<0.000000e+00> : vector<8x128xf32>
    %27 = tpu.matmul %24, %26, %cst_14 {dimension_numbers = #tpu.dot_dimension_numbers<[1], [0], [0], [1], [0, 0, 1, 1], [], []>} : vector<8x128xbf16>, vector<128x128xbf16>, vector<8x128xf32> -> vector<8x128xf32>
    %28 = arith.truncf %23 : vector<8x128xf32> to vector<8x128xbf16>
    %c2 = arith.constant 2 : index
    %c0_15 = arith.constant 0 : index
    %c0_16 = arith.constant 0 : index
    %29 = vector.load %arg2[%c2, %c0_15, %c0_16] : memref<11x128x128xbf16, #tpu.memory_space<vmem>>, vector<1x128x128xbf16>
    %30 = vector.shape_cast %29 : vector<1x128x128xbf16> to vector<128x128xbf16>
    %cst_17 = arith.constant dense<0.000000e+00> : vector<8x128xf32>
    %31 = tpu.matmul %28, %30, %cst_17 {dimension_numbers = #tpu.dot_dimension_numbers<[1], [0], [0], [1], [0, 0, 1, 1], [], []>} : vector<8x128xbf16>, vector<128x128xbf16>, vector<8x128xf32> -> vector<8x128xf32>
    %32 = vector.extract_strided_slice %2 {offsets = [2, 0], sizes = [1, 128], strides = [1, 1]} : vector<8x128xf32> to vector<1x128xf32>
    %33 = vector.broadcast %32 : vector<1x128xf32> to vector<8x128xf32>
    %34 = arith.addf %31, %33 : vector<8x128xf32>
    %cst_18 = arith.constant 0.000000e+00 : f32
    %35 = vector.broadcast %cst_18 : f32 to vector<8x128xf32>
    %36 = arith.maximumf %34, %35 : vector<8x128xf32>
    %37 = arith.truncf %36 : vector<8x128xf32> to vector<8x128xbf16>
    %c7 = arith.constant 7 : index
    %c0_19 = arith.constant 0 : index
    %c0_20 = arith.constant 0 : index
    %38 = vector.load %arg2[%c7, %c0_19, %c0_20] : memref<11x128x128xbf16, #tpu.memory_space<vmem>>, vector<1x128x128xbf16>
    %39 = vector.shape_cast %38 : vector<1x128x128xbf16> to vector<128x128xbf16>
    %cst_21 = arith.constant dense<0.000000e+00> : vector<8x128xf32>
    %40 = tpu.matmul %37, %39, %cst_21 {dimension_numbers = #tpu.dot_dimension_numbers<[1], [0], [0], [1], [0, 0, 1, 1], [], []>} : vector<8x128xbf16>, vector<128x128xbf16>, vector<8x128xf32> -> vector<8x128xf32>
    %41 = arith.addf %27, %40 : vector<8x128xf32>
    %42 = arith.truncf %36 : vector<8x128xf32> to vector<8x128xbf16>
    %c3 = arith.constant 3 : index
    %c0_22 = arith.constant 0 : index
    %c0_23 = arith.constant 0 : index
    %43 = vector.load %arg2[%c3, %c0_22, %c0_23] : memref<11x128x128xbf16, #tpu.memory_space<vmem>>, vector<1x128x128xbf16>
    %44 = vector.shape_cast %43 : vector<1x128x128xbf16> to vector<128x128xbf16>
    %cst_24 = arith.constant dense<0.000000e+00> : vector<8x128xf32>
    %45 = tpu.matmul %42, %44, %cst_24 {dimension_numbers = #tpu.dot_dimension_numbers<[1], [0], [0], [1], [0, 0, 1, 1], [], []>} : vector<8x128xbf16>, vector<128x128xbf16>, vector<8x128xf32> -> vector<8x128xf32>
    %46 = vector.extract_strided_slice %2 {offsets = [3, 0], sizes = [1, 128], strides = [1, 1]} : vector<8x128xf32> to vector<1x128xf32>
    %47 = vector.broadcast %46 : vector<1x128xf32> to vector<8x128xf32>
    %48 = arith.addf %45, %47 : vector<8x128xf32>
    %cst_25 = arith.constant 0.000000e+00 : f32
    %49 = vector.broadcast %cst_25 : f32 to vector<8x128xf32>
    %50 = arith.maximumf %48, %49 : vector<8x128xf32>
    %51 = arith.truncf %50 : vector<8x128xf32> to vector<8x128xbf16>
    %c8 = arith.constant 8 : index
    %c0_26 = arith.constant 0 : index
    %c0_27 = arith.constant 0 : index
    %52 = vector.load %arg2[%c8, %c0_26, %c0_27] : memref<11x128x128xbf16, #tpu.memory_space<vmem>>, vector<1x128x128xbf16>
    %53 = vector.shape_cast %52 : vector<1x128x128xbf16> to vector<128x128xbf16>
    %cst_28 = arith.constant dense<0.000000e+00> : vector<8x128xf32>
    %54 = tpu.matmul %51, %53, %cst_28 {dimension_numbers = #tpu.dot_dimension_numbers<[1], [0], [0], [1], [0, 0, 1, 1], [], []>} : vector<8x128xbf16>, vector<128x128xbf16>, vector<8x128xf32> -> vector<8x128xf32>
    %55 = arith.addf %41, %54 : vector<8x128xf32>
    %56 = arith.truncf %50 : vector<8x128xf32> to vector<8x128xbf16>
    %c4 = arith.constant 4 : index
    %c0_29 = arith.constant 0 : index
    %c0_30 = arith.constant 0 : index
    %57 = vector.load %arg2[%c4, %c0_29, %c0_30] : memref<11x128x128xbf16, #tpu.memory_space<vmem>>, vector<1x128x128xbf16>
    %58 = vector.shape_cast %57 : vector<1x128x128xbf16> to vector<128x128xbf16>
    %cst_31 = arith.constant dense<0.000000e+00> : vector<8x128xf32>
    %59 = tpu.matmul %56, %58, %cst_31 {dimension_numbers = #tpu.dot_dimension_numbers<[1], [0], [0], [1], [0, 0, 1, 1], [], []>} : vector<8x128xbf16>, vector<128x128xbf16>, vector<8x128xf32> -> vector<8x128xf32>
    %60 = vector.extract_strided_slice %2 {offsets = [4, 0], sizes = [1, 128], strides = [1, 1]} : vector<8x128xf32> to vector<1x128xf32>
    %61 = vector.broadcast %60 : vector<1x128xf32> to vector<8x128xf32>
    %62 = arith.addf %59, %61 : vector<8x128xf32>
    %cst_32 = arith.constant 0.000000e+00 : f32
    %63 = vector.broadcast %cst_32 : f32 to vector<8x128xf32>
    %64 = arith.maximumf %62, %63 : vector<8x128xf32>
    %65 = arith.truncf %64 : vector<8x128xf32> to vector<8x128xbf16>
    %c9 = arith.constant 9 : index
    %c0_33 = arith.constant 0 : index
    %c0_34 = arith.constant 0 : index
    %66 = vector.load %arg2[%c9, %c0_33, %c0_34] : memref<11x128x128xbf16, #tpu.memory_space<vmem>>, vector<1x128x128xbf16>
    %67 = vector.shape_cast %66 : vector<1x128x128xbf16> to vector<128x128xbf16>
    %cst_35 = arith.constant dense<0.000000e+00> : vector<8x128xf32>
    %68 = tpu.matmul %65, %67, %cst_35 {dimension_numbers = #tpu.dot_dimension_numbers<[1], [0], [0], [1], [0, 0, 1, 1], [], []>} : vector<8x128xbf16>, vector<128x128xbf16>, vector<8x128xf32> -> vector<8x128xf32>
    %69 = arith.addf %55, %68 : vector<8x128xf32>
    %70 = arith.truncf %64 : vector<8x128xf32> to vector<8x128xbf16>
    %c5 = arith.constant 5 : index
    %c0_36 = arith.constant 0 : index
    %c0_37 = arith.constant 0 : index
    %71 = vector.load %arg2[%c5, %c0_36, %c0_37] : memref<11x128x128xbf16, #tpu.memory_space<vmem>>, vector<1x128x128xbf16>
    %72 = vector.shape_cast %71 : vector<1x128x128xbf16> to vector<128x128xbf16>
    %cst_38 = arith.constant dense<0.000000e+00> : vector<8x128xf32>
    %73 = tpu.matmul %70, %72, %cst_38 {dimension_numbers = #tpu.dot_dimension_numbers<[1], [0], [0], [1], [0, 0, 1, 1], [], []>} : vector<8x128xbf16>, vector<128x128xbf16>, vector<8x128xf32> -> vector<8x128xf32>
    %74 = vector.extract_strided_slice %2 {offsets = [5, 0], sizes = [1, 128], strides = [1, 1]} : vector<8x128xf32> to vector<1x128xf32>
    %75 = vector.broadcast %74 : vector<1x128xf32> to vector<8x128xf32>
    %76 = arith.addf %73, %75 : vector<8x128xf32>
    %cst_39 = arith.constant 0.000000e+00 : f32
    %77 = vector.broadcast %cst_39 : f32 to vector<8x128xf32>
    %78 = arith.maximumf %76, %77 : vector<8x128xf32>
    %79 = arith.truncf %78 : vector<8x128xf32> to vector<8x128xbf16>
    %c10 = arith.constant 10 : index
    %c0_40 = arith.constant 0 : index
    %c0_41 = arith.constant 0 : index
    %80 = vector.load %arg2[%c10, %c0_40, %c0_41] : memref<11x128x128xbf16, #tpu.memory_space<vmem>>, vector<1x128x128xbf16>
    %81 = vector.shape_cast %80 : vector<1x128x128xbf16> to vector<128x128xbf16>
    %cst_42 = arith.constant dense<0.000000e+00> : vector<8x128xf32>
    %82 = tpu.matmul %79, %81, %cst_42 {dimension_numbers = #tpu.dot_dimension_numbers<[1], [0], [0], [1], [0, 0, 1, 1], [], []>} : vector<8x128xbf16>, vector<128x128xbf16>, vector<8x128xf32> -> vector<8x128xf32>
    %83 = arith.addf %69, %82 : vector<8x128xf32>
    %84 = vector.extract_strided_slice %2 {offsets = [6, 0], sizes = [1, 128], strides = [1, 1]} : vector<8x128xf32> to vector<1x128xf32>
    %85 = vector.broadcast %84 : vector<1x128xf32> to vector<8x128xf32>
    %86 = arith.addf %83, %85 : vector<8x128xf32>
    %cst_43 = arith.constant dense<0xFF800000> : vector<8xf32>
    %87 = vector.multi_reduction <maximumf>, %86, %cst_43 [1] : vector<8x128xf32> to vector<8xf32>
    %88 = vector.shape_cast %87 : vector<8xf32> to vector<8x1xf32>
    %89 = vector.broadcast %88 : vector<8x1xf32> to vector<8x128xf32>
    %90 = arith.subf %86, %89 : vector<8x128xf32>
    %91 = math.exp %90 : vector<8x128xf32>
    %c0_44 = arith.constant 0 : index
    %c0_45 = arith.constant 0 : index
    %92 = vector.load %arg4[%c0_44, %c0_45] : memref<128x128xf32, #tpu.memory_space<vmem>>, vector<128x128xf32>
    %cst_46 = arith.constant dense<0.000000e+00> : vector<8x128xf32>
    %93 = tpu.matmul %91, %92, %cst_46 {dimension_numbers = #tpu.dot_dimension_numbers<[1], [0], [0], [1], [0, 0, 1, 1], [], []>} : vector<8x128xf32>, vector<128x128xf32>, vector<8x128xf32> -> vector<8x128xf32>
    %cst_47 = arith.constant 1.000000e-30 : f32
    %94 = vector.broadcast %cst_47 : f32 to vector<8x128xf32>
    %95 = arith.maximumf %93, %94 : vector<8x128xf32>
    %96 = tpu.reciprocal %95 : vector<8x128xf32> -> vector<8x128xf32>
    %97 = arith.mulf %91, %96 : vector<8x128xf32>
    %c0_48 = arith.constant 0 : index
    %c0_49 = arith.constant 0 : index
    %c0_50 = arith.constant 0 : index
    %98 = vector.load %arg5[%c0_48, %c0_49, %c0_50] : memref<1x8x128xf32, #tpu.memory_space<vmem>>, vector<1x8x128xf32>
    %99 = vector.shape_cast %98 : vector<1x8x128xf32> to vector<8x128xf32>
    %100 = vector.shape_cast %97 : vector<8x128xf32> to vector<1x8x128xf32>
    tpu.vector_store %arg5[%c0_48, %c0_49, %c0_50], %100 {strides = array<i32>} : memref<1x8x128xf32, #tpu.memory_space<vmem>>, vector<1x8x128xf32>,
    return
  }
  func.func @transform_0(%arg0: i32) -> (i32, i32, i32) {
    %c0_i32 = arith.constant 0 : i32
    %c0_i32_0 = arith.constant 0 : i32
    %c0_i32_1 = arith.constant 0 : i32
    return %arg0, %c0_i32, %c0_i32_0 : i32, i32, i32
  }
  func.func @transform_1(%arg0: i32) -> (i32, i32, i32) {
    %c0_i32 = arith.constant 0 : i32
    %c0_i32_0 = arith.constant 0 : i32
    %c0_i32_1 = arith.constant 0 : i32
    %c0_i32_2 = arith.constant 0 : i32
    return %c0_i32, %c0_i32_0, %c0_i32_1 : i32, i32, i32
  }
  func.func @transform_2(%arg0: i32) -> (i32, i32) {
    %c0_i32 = arith.constant 0 : i32
    %c0_i32_0 = arith.constant 0 : i32
    %c0_i32_1 = arith.constant 0 : i32
    return %c0_i32, %c0_i32_0 : i32, i32
  }
  func.func @transform_3(%arg0: i32) -> (i32, i32) {
    %c0_i32 = arith.constant 0 : i32
    %c0_i32_0 = arith.constant 0 : i32
    %c0_i32_1 = arith.constant 0 : i32
    return %c0_i32, %c0_i32_0 : i32, i32
  }
  func.func @transform_4(%arg0: i32) -> (i32, i32, i32) {
    %c0_i32 = arith.constant 0 : i32
    %c0_i32_0 = arith.constant 0 : i32
    %c0_i32_1 = arith.constant 0 : i32
    return %arg0, %c0_i32, %c0_i32_0 : i32, i32, i32
  }
}

</mosaic_0001>

<bundles_post_ra>
// kernel: tpu_custom_call.1
= control target key start
LH: loop header
LB: loop body
LE: loop exit
PB: predicated region body
PF: predicated region fallthrough
CT: control target
= control target key end

     0   :  { %9 = vsyncpa [#allocation3], 0  ;;  %s2970_s0 = inlined_call_operand.hbm [shape: f32[4,8,128], index: 0, kind: input, shape index: {}]   ;;  %s2971_s1 = inlined_call_operand.hbm [shape: bf16[11,128,128], index: 1, kind: input, shape index: {}]   ;;  %s2972_s2 = inlined_call_operand.hbm [shape: f32[8,128], index: 2, kind: input, shape index: {}]   ;;  %s2973_s3 = inlined_call_operand.hbm [shape: f32[128,128], index: 3, kind: input, shape index: {}]   ;;  %s2974_s4 = inlined_call_operand.hbm [shape: f32[4,8,128], index: 4, kind: output, shape index: {}]  }
   0x1   :  { %11 = vsyncpa [#allocation3 + $0x1], 0 }
   0x2   :  { %12 = vsyncpa [#allocation6], 0 }
   0x3   :  { %13 = vsyncpa [#allocation9], 0 }
   0x4   :  { %14 = vsyncpa [#allocation4], 0 }
   0x5   :  { %16 = vsyncpa [#allocation4 + $0x1], 0  ;;  %s2574_s15 = smov 0   ;;  %s2576_s16 = smov 0  }
   0x6   :  { %s2578_s17 = smov 0   ;;  %s2580_s18 = smov 0  }
   0x7 LB: > { %s2595_s19 = sadd.s32 4294967295, %s2535_s18   ;;  %s1670_s20 = sadd.s32 4294967294, %s2535_s18   ;;  %s2535_s18 = sphi %s2580_s18, %s2996_s18   ;;  %s2531_s17 = sphi %s2578_s17, %s2995_s17   ;;  %s2527_s16 = sphi %s2576_s16, %s2994_s16   ;;  %s2523_s15 = sphi %s2574_s15, %s2993_s15  }
   0x8   : > { %p42_p0 = scmp.ne.s32.totalorder %s2527_s16, %s2523_s15  ;;  %p2975_p1 = scmp.eq.s32.totalorder %s2595_s19, 0 }
   0x9   : > { %p135_p3 = scmp.eq.s32.totalorder %s1670_s20, 3  ;;  %p1671_p5 = scmp.ge.s32.totalorder %s2535_s18, 1 }
   0xa   : > { %p2604_p4 = por %p2975_p1, %p42_p0  ;;  %p142_p7 = scmp.lt.s32.totalorder %s2535_s18, 5 }
   0xb   : > { %p2609_p6 = por %p135_p3, %p42_p0  ;;  %s2537_s24 = smov [#allocation5]  }
   0xc   : > { %s2978_s21 = scalar_select %p2604_p4, 1, 0 }
   0xd   : > { %s2979_s22 = scalar_select %p2609_p6, 1, 0 }
   0xe   : > { %p2614_p8 = pnand %p1671_p5, %p142_p7  ;;  %s154_s25 = sshll.u32 %s2537_s24, 4  ;;  %s2618_s25 = int_to_ptr.vmem [resolvable:$true] %s154_s25 }
   0xf   : > { %s2538_s27 = smov [#allocation7]   ;;  %s2539_s29 = smov [#allocation8]  }
  0x10   : > { %s2980_s23 = scalar_select %p2614_p8, 1, 0 }
  0x11   : > { %p2187_p9 = pneg %p2614_p8  ;;  %s168_s28 = sshll.u32 %s2538_s27, 4  ;;  %s2628_s28 = int_to_ptr.vmem [resolvable:$true] %s168_s28 }
  0x12   : > { %s2630_s30 = sshll.u32 %s2539_s29, 4  ;;  %s2347_s7 = scalar_lea.hbm %s2971_s1, 11264  ;;  %s179_s30 = int_to_ptr.vmem [resolvable:$true] %s2630_s30 }
  0x13   : > { %p2624_p10 = pnand %p2187_p9, %p2975_p1  ;;  %p2348_p11 = scmp.ne.s32.totalorder %s2971_s1, %s2347_s7 }
  0x14   : > { %p2354_p3 = scmp.lt.u32.totalorder %s2347_s7, %s2971_s1 }
  0x15   : > { %p2640_p12 = pneg %p2624_p10 }
  0x17   : > { %p2350_p13 = pnand %p2640_p12, %p2348_p11 }
  0x19   : > { %p2351_p0 = pneg %p2350_p13 }
  0x1b   : > { %p2356_p5 = pnand %p2354_p3, %p2351_p0 }
  0x1d   : > { %2359 = shalt.err (!%p2356_p5)
}
  0x1e   : > { %s2360_s13 = scalar_lea.vmem %s2618_s25, 11264  ;;  %p2368_p2 = scmp.lt.s32.totalorder %s2618_s25, %s2618_s25 }
  0x1f   : > { %p2361_p7 = scmp.ne.s32.totalorder %s2618_s25, %s2360_s13  ;;  %p2369_p6 = scmp.lt.s32.totalorder %s2360_s13, %s2360_s13 }
  0x21   : > { %p2363_p9 = pnand %p2361_p7, %p2640_p12  ;;  %p2370_p11 = por %p2369_p6, %p2368_p2 }
  0x23   : > { %p2364_p1 = pneg %p2363_p9 }
  0x25   : > { %p2371_p13 = pnand %p2370_p11, %p2364_p1 }
  0x27   : > { %2374 = shalt.err (!%p2371_p13)
}
  0x28   : > { %s2540_s14 = smov 64   ;;  %s2541_s20 = smov 4  }
  0x29   : > { %2190 = dma.hbm_to_vmem [thread:$0]  (!%p2624_p10), %s2971_s1, 11264, %s2618_s25, [#allocation6], %s2540_s14, %s2540_s14, %s2541_s20  }
  0x2a   : > { %s2375_s6 = scalar_lea.hbm %s2972_s2, 128 }
  0x2b   : > { %p2376_p2 = scmp.ne.s32.totalorder %s2972_s2, %s2375_s6  ;;  %p2382_p0 = scmp.lt.u32.totalorder %s2375_s6, %s2972_s2 }
  0x2d   : > { %p2378_p1 = pnand %p2376_p2, %p2640_p12 }
  0x2f   : > { %p2379_p6 = pneg %p2378_p1 }
  0x31   : > { %p2384_p3 = pnand %p2382_p0, %p2379_p6 }
  0x33   : > { %2387 = shalt.err (!%p2384_p3)
}
  0x34   : > { %s2388_s25 = scalar_lea.vmem %s2628_s28, 128  ;;  %p2396_p11 = scmp.lt.s32.totalorder %s2628_s28, %s2628_s28 }
  0x35   : > { %p2389_p5 = scmp.ne.s32.totalorder %s2628_s28, %s2388_s25  ;;  %p2397_p13 = scmp.lt.s32.totalorder %s2388_s25, %s2388_s25 }
  0x37   : > { %p2391_p7 = pnand %p2389_p5, %p2640_p12  ;;  %p2398_p2 = por %p2397_p13, %p2396_p11 }
  0x39   : > { %p2392_p9 = pneg %p2391_p7 }
  0x3b   : > { %p2399_p1 = pnand %p2398_p2, %p2392_p9 }
  0x3d   : > { %2402 = shalt.err (!%p2399_p1)
}
  0x3e   : > { %2193 = dma.hbm_to_vmem [thread:$0]  (!%p2624_p10), %s2972_s2, 128, %s2628_s28, [#allocation6]  }
  0x3f   : > { %s2403_s24 = scalar_lea.hbm %s2973_s3, 2048 }
  0x40   : > { %p2404_p6 = scmp.ne.s32.totalorder %s2973_s3, %s2403_s24  ;;  %p2410_p5 = scmp.lt.u32.totalorder %s2403_s24, %s2973_s3 }
  0x42   : > { %p2406_p0 = pnand %p2404_p6, %p2640_p12 }
  0x44   : > { %p2407_p3 = pneg %p2406_p0 }
  0x46   : > { %p2412_p7 = pnand %p2410_p5, %p2407_p3 }
  0x48   : > { %2415 = shalt.err (!%p2412_p7)
}
  0x49   : > { %s2416_s7 = scalar_lea.vmem %s179_s30, 2048  ;;  %p2424_p2 = scmp.lt.s32.totalorder %s179_s30, %s179_s30 }
  0x4a   : > { %p2417_p9 = scmp.ne.s32.totalorder %s179_s30, %s2416_s7  ;;  %p2425_p1 = scmp.lt.s32.totalorder %s2416_s7, %s2416_s7 }
  0x4c   : > { %p2419_p11 = pnand %p2417_p9, %p2640_p12  ;;  %p2426_p4 = por %p2425_p1, %p2424_p2 }
  0x4e   : > { %p2420_p13 = pneg %p2419_p11 }
  0x50   : > { %p2427_p8 = pnand %p2426_p4, %p2420_p13 }
  0x52   : > { %2430 = shalt.err (!%p2427_p8)
}
  0x53   : > { %s2542_s28 = smov 128   ;;  %s2543_s10 = smov 8  }
  0x54   : > { %2196 = dma.hbm_to_vmem [thread:$0]  (!%p2624_p10), %s2973_s3, 2048, %s179_s30, [#allocation9], %s2542_s28, %s2542_s28, %s2543_s10  }
  0x55   : > { %s2704_s11 = sadd.s32 1, %s2535_s18   ;;  %s29_s12 = sadd.s32 1, %s2531_s17 }
  0x56   : > { %s26_s25 = ssub.s32 %s2535_s18, %s2704_s11  ;;  %p36_p8 = scmp.ne.s32.totalorder %s2531_s17, %s2527_s16 }
  0x57   : > { %p27_p4 = scmp.eq.s32.totalorder %s26_s25, 0  ;;  %p37_p12 = scmp.eq.s32.totalorder %s2535_s18, 0 }
  0x58   : > { %p2208_p6 = scmp.lt.s32.totalorder %s2535_s18, 4  ;;  %p2983_p3 = scmp.eq.s32.totalorder %s2595_s19, 3 }
  0x59   : > { %s2714_s13 = scalar_select %p27_p4, %s2531_s17, %s29_s12  }
  0x5a   : > { %p38_p0 = por %p37_p12, %p36_p8  ;;  %p2718_p5 = por %p2983_p3, %p36_p8 }
  0x5b   : > { %s192_s26 = sand.u32 1, %s2531_s17   ;;  %s1677_s20 = sshll.u32 %s2535_s18, 7 }
  0x5c   : > { %s1676_s30 = sshll.u32 %s192_s26, 3  ;;  %s2727_s29 = scalar_lea.hbm %s2970_s0, %s1677_s20 }
  0x5d   : > { %s196_s5 = scalar_lea.vmem [#allocation2], %s1676_s30  ;;  %p2729_p10 = pnand %p2208_p6, %p38_p0 }
  0x5e   : > { %s203_s6 = sshll.u32 %s196_s5, 4  ;;  %s193_s28 = scalar_lea.sflag [#allocation3], %s192_s26  ;;  %s2733_s6 = int_to_ptr.vmem [resolvable:$true] %s203_s6 }
  0x5f   : > { %s2431_s10 = scalar_lea.hbm %s2727_s29, 128  ;;  %p2433_p9 = pneg %p2729_p10 }
  0x60   : > { %p2432_p7 = scmp.ne.s32.totalorder %s2727_s29, %s2431_s10  ;;  %s2436_s25 = scalar_lea.hbm %s2970_s0, 512 }
  0x61   : > { %p2437_p2 = scmp.lt.u32.totalorder %s2727_s29, %s2970_s0  ;;  %p2438_p1 = scmp.lt.u32.totalorder %s2436_s25, %s2431_s10 }
  0x62   : > { %p2434_p11 = pnand %p2433_p9, %p2432_p7  ;;  %p2440_p8 = scmp.lt.u32.totalorder %s2431_s10, %s2727_s29 }
  0x63   : > { %p2439_p4 = por %p2438_p1, %p2437_p2 }
  0x64   : > { %p2435_p13 = pneg %p2434_p11 }
  0x65   : > { %p2441_p12 = por %p2440_p8, %p2439_p4 }
  0x67   : > { %p2442_p6 = pnand %p2441_p12, %p2435_p13 }
  0x69   : > { %2445 = shalt.err (!%p2442_p6)
}
  0x6a   : > { %s2446_s26 = scalar_lea.vmem %s2733_s6, 128  ;;  %s2544_s30 = smov [#allocation2]  }
  0x6b   : > { %p2447_p0 = scmp.ne.s32.totalorder %s2733_s6, %s2446_s26  ;;  %s2451_s24 = sshll.u32 %s2544_s30, 4  ;;  %s2452_s24 = int_to_ptr.vmem [resolvable:$false] %s2451_s24 }
  0x6c   : > { %s2453_s27 = scalar_lea.vmem %s2452_s24, 256  ;;  %p2454_p11 = scmp.lt.s32.totalorder %s2733_s6, %s2452_s24 }
  0x6d   : > { %p2449_p3 = pnand %p2447_p0, %p2433_p9  ;;  %p2455_p2 = scmp.lt.s32.totalorder %s2453_s27, %s2446_s26 }
  0x6f   : > { %p2450_p7 = pneg %p2449_p3  ;;  %p2456_p1 = por %p2455_p2, %p2454_p11 }
  0x71   : > { %p2457_p4 = pnand %p2456_p1, %p2450_p7 }
  0x73   : > { %2460 = shalt.err (!%p2457_p4)
}
  0x74   : > { %2200 = dma.hbm_to_vmem [thread:$0]  (!%p2729_p10), %s2727_s29, 128, %s2733_s6, %s193_s28  }
  0x75   : > { %p2986_p13 = scmp.ne.s32.totalorder %s2980_s23, 0 }
  0x76   : > { %s2763_s5 = sand.u32 (!%p2986_p13), 1, %s2527_s16   ;;  %p2987_p9 = scmp.ne.s32.totalorder (!%p2986_p13), %s2978_s21, 0 }
  0x77   : > { %212 = sbr.rel (%p2986_p13) target bundleno = 2124 (0x84c), region = 36  ;;  %s1679_s10 = sshll.u32 (!%p2986_p13), %s2763_s5, 3 }
  0x78   : > { %s215_s8 = scalar_lea.sflag (!%p2986_p13), [#allocation3], %s2763_s5  ;;  %s2769_s9 = scalar_lea.vmem (!%p2986_p13), [#allocation2], %s1679_s10 }
  0x7e   : > { %2506 = dma.done.wait (%p2987_p9), %s215_s8, 128  }
  0x7f   : > { %2508 = vsyncadd (%p2987_p9), %s215_s8, 4294967168  ;;  %p2988_p10 = scmp.eq.s32.totalorder %s2595_s19, 0 }
  0x81   : > { %2510 = dma.done.wait (%p2988_p10), [#allocation6], 11392   ;;  %p2989_p8 = pmov %p2988_p10 }
  0x83   : > { %2512 = vsyncadd (%p2989_p8), [#allocation6], 4294955904  ;;  %p2990_p12 = pmov %p2989_p8 }
  0x84   : > { %p2991_p6 = pmov %p2989_p8 }
  0x85   : > { %2514 = dma.done.wait (%p2990_p12), [#allocation9], 2048  }
  0x86   : > { %2516 = vsyncadd (%p2991_p6), [#allocation9], 4294965248  ;;  %v2545_v0 = vmov 0.0   ;;  %vm2546_vm0 = vmmov 0   ;;  %v2255_v1 = vld [vmem:[#allocation5] sm:$0xff]   ;;  %v2256_v2 = vld [vmem:[#allocation5 + $0x8] sm:$0xff]   ;;  %v275_v26 = vlaneseq }
  0x87   : > { %1892 = vmatprep.subr.bf16.mxu0 %v2545_v0  ;;  %1908 = vmatprep.mubr.msk.bf16.mxu0 %vm2546_vm0, %v2545_v0  ;;  %v2257_v3 = vld [vmem:[#allocation5 + $0x10] sm:$0xff]   ;;  %v2263_v4 = vld [vmem:[#allocation5 + $0x40] sm:$0xff]   ;;  %v2258_v5 = vld [vmem:[#allocation5 + $0x18] sm:$0xff]   ;;  %s1773_s21 = sshll.u32 %s2595_s19, 7  ;;  %s254_s23 = scalar_lea.vmem [#allocation10], %s1679_s10 }
  0x88   : > { %1912 = vmatprep.subr.bf16.mxu1 %v2545_v0  ;;  %1928 = vmatprep.mubr.msk.bf16.mxu1 %vm2546_vm0, %v2545_v0  ;;  %v2264_v6 = vld [vmem:[#allocation5 + $0x48] sm:$0xff]   ;;  %v2259_v7 = vld [vmem:[#allocation5 + $0x20] sm:$0xff]   ;;  %v2265_v8 = vld [vmem:[#allocation5 + $0x50] sm:$0xff]   ;;  %v2815_v27 = vshrl.u32 %v275_v26, 7  ;;  %s1571_s29 = sshll.u32 %s254_s23, 4  ;;  %s2927_s28 = scalar_lea.hbm %s2974_s4, %s1773_s21  ;;  %s2929_s29 = int_to_ptr.vmem [resolvable:$true] %s1571_s29 }
  0x89   : > { %1893 = vmatpush3.bf16.msra.mxu0 %v2255_v1  ;;  %1913 = vmatpush3.bf16.msra.mxu1 %v2263_v4  ;;  %v2260_v9 = vld [vmem:[#allocation5 + $0x28] sm:$0xff]   ;;  %v2266_v10 = vld [vmem:[#allocation5 + $0x58] sm:$0xff]   ;;  %v2261_v11 = vld [vmem:[#allocation5 + $0x30] sm:$0xff]   ;;  %s1558_s25 = scalar_lea.sflag [#allocation4], %s2763_s5  ;;  %s2461_s12 = scalar_lea.vmem %s2929_s29, 128 }
  0x8a   : > { %1894 = vmatprep.subr.bf16.mxu0 %v2545_v0  ;;  %1914 = vmatprep.subr.bf16.mxu1 %v2545_v0  ;;  %v2267_v12 = vld [vmem:[#allocation5 + $0x60] sm:$0xff]   ;;  %v2262_v13 = vld [vmem:[#allocation5 + $0x38] sm:$0xff]   ;;  %v2268_v15 = vld [vmem:[#allocation5 + $0x68] sm:$0xff]   ;;  %v277_v28 = vsub.s32 0, %v2815_v27  ;;  %v370_v31 = vsub.s32 2, %v2815_v27  ;;  %v393_v49 = vsub.s32 1, %v2815_v27  ;;  %p2462_p0 = scmp.ne.s32.totalorder %s2929_s29, %s2461_s12 }
  0x8b   : > { %v256_v14 = vld [vmem:[%s2769_s9] sm:$0xff]  ;;  %v2271_v19 = vld [vmem:[#allocation5 + $0x80] sm:$0xff]   ;;  %v2272_v20 = vld [vmem:[#allocation5 + $0x88] sm:$0xff]   ;;  %s2548_s19 = smov [#allocation10]  }
  0x8c   : > { %v258_v16 = vpack.c.bf16 %v256_v14, %v256_v14  ;;  %v2269_v17 = vld [vmem:[#allocation5 + $0x70] sm:$0xff]   ;;  %v2270_v18 = vld [vmem:[#allocation5 + $0x78] sm:$0xff]   ;;  %v2275_v23 = vld [vmem:[#allocation5 + $0xa0] sm:$0xff]   ;;  %v371_v34 = vrot.slane %v256_v14, %v370_v31  ;;  %p2463_p3 = pnand %p2462_p0, %p2718_p5  ;;  %s2465_s20 = sshll.u32 %s2548_s19, 4  ;;  %s2466_s20 = int_to_ptr.vmem [resolvable:$false] %s2465_s20 }
  0x8d   : > { %1895 = vmatpush3.bf16.msra.mxu0 %v2256_v2  ;;  %1915 = vmatpush3.bf16.msra.mxu1 %v2264_v6  ;;  %v2273_v21 = vld [vmem:[#allocation5 + $0x90] sm:$0xff]   ;;  %v2274_v22 = vld [vmem:[#allocation5 + $0x98] sm:$0xff]   ;;  %v2276_v24 = vld [vmem:[#allocation5 + $0xa8] sm:$0xff]   ;;  %s2467_s26 = scalar_lea.vmem %s2466_s20, 256  ;;  %p2468_p11 = scmp.lt.s32.totalorder %s2929_s29, %s2466_s20 }
  0x8e   : > { %1896 = vmatprep.subr.bf16.mxu0 %v2545_v0  ;;  %1916 = vmatprep.subr.bf16.mxu1 %v2545_v0  ;;  %v2277_v25 = vld [vmem:[#allocation5 + $0xb0] sm:$0xff]   ;;  %v2818_v29 = vld [vmem:[#allocation7] sm:$0xff]  ;;  %v2278_v41 = vld [vmem:[#allocation5 + $0xb8] sm:$0xff]   ;;  %p2464_p7 = pneg %p2463_p3  ;;  %p2469_p2 = scmp.lt.s32.totalorder %s2467_s26, %s2461_s12 }
  0x8f   : > { %v278_v30 = vrot.slane %v2818_v29, %v277_v28  ;;  %v2287_v42 = vld [vmem:[#allocation5 + $0x1c0] sm:$0xff]   ;;  %v2288_v43 = vld [vmem:[#allocation5 + $0x1c8] sm:$0xff]   ;;  %v2289_v44 = vld [vmem:[#allocation5 + $0x1d0] sm:$0xff]   ;;  %v394_v50 = vrot.slane %v2818_v29, %v393_v49  ;;  %v522_v4 = vrot.slane %v2818_v29, %v370_v31 }
  0x90   : > { %v2290_v45 = vld [vmem:[#allocation5 + $0x1d8] sm:$0xff]   ;;  %v2291_v46 = vld [vmem:[#allocation5 + $0x1e0] sm:$0xff]   ;;  %v2292_v47 = vld [vmem:[#allocation5 + $0x1e8] sm:$0xff]   ;;  %p2470_p1 = por %p2469_p2, %p2468_p11 }
  0x91   : > { %1897 = vmatpush3.bf16.msra.mxu0 %v2257_v3  ;;  %1917 = vmatpush3.bf16.msra.mxu1 %v2265_v8  ;;  %v2293_v48 = vld [vmem:[#allocation5 + $0x1f0] sm:$0xff]   ;;  %v2279_v57 = vld [vmem:[#allocation5 + $0x180] sm:$0xff]   ;;  %v2280_v59 = vld [vmem:[#allocation5 + $0x188] sm:$0xff]  }
  0x92   : > { %1898 = vmatprep.subr.bf16.mxu0 %v2545_v0  ;;  %1918 = vmatprep.subr.bf16.mxu1 %v2545_v0  ;;  %v2281_v60 = vld [vmem:[#allocation5 + $0x190] sm:$0xff]   ;;  %v2282_v61 = vld [vmem:[#allocation5 + $0x198] sm:$0xff]   ;;  %v2283_v62 = vld [vmem:[#allocation5 + $0x1a0] sm:$0xff]   ;;  %p2471_p4 = pnand %p2470_p1, %p2464_p7 }
  0x93   : > { %v2284_v63 = vld [vmem:[#allocation5 + $0x1a8] sm:$0xff]   ;;  %v2285_v1 = vld [vmem:[#allocation5 + $0x1b0] sm:$0xff]   ;;  %v2286_v2 = vld [vmem:[#allocation5 + $0x1b8] sm:$0xff]  }
  0x94   : > { %v2294_v3 = vld [vmem:[#allocation5 + $0x1f8] sm:$0xff]   ;;  %v2297_v14 = vld [vmem:[#allocation5 + $0xd0] sm:$0xff]   ;;  %v2305_v26 = vld [vmem:[#allocation5 + $0x208] sm:$0xff]  }
  0x95   : > { %1899 = vmatpush3.bf16.msra.mxu0 %v2258_v5  ;;  %1919 = vmatpush3.bf16.msra.mxu1 %v2266_v10  ;;  %v2306_v28 = vld [vmem:[#allocation5 + $0x108] sm:$0xff]   ;;  %v2308_v31 = vld [vmem:[#allocation5 + $0x110] sm:$0xff]  }
  0x96   : > { %1900 = vmatprep.subr.bf16.mxu0 %v2545_v0  ;;  %1920 = vmatprep.subr.bf16.mxu1 %v2545_v0 }
  0x99   : > { %1901 = vmatpush3.bf16.msra.mxu0 %v2259_v7  ;;  %1921 = vmatpush3.bf16.msra.mxu1 %v2267_v12 }
  0x9a   : > { %1902 = vmatprep.subr.bf16.mxu0 %v2545_v0  ;;  %1922 = vmatprep.subr.bf16.mxu1 %v2545_v0 }
  0x9d   : > { %1903 = vmatpush3.bf16.msra.mxu0 %v2260_v9  ;;  %1923 = vmatpush3.bf16.msra.mxu1 %v2268_v15  ;;  %v2298_v15 = vld [vmem:[#allocation5 + $0xd8] sm:$0xff]  }
  0x9e   : > { %1904 = vmatprep.subr.bf16.mxu0 %v2545_v0  ;;  %1924 = vmatprep.subr.bf16.mxu1 %v2545_v0 }
  0xa1   : > { %1905 = vmatpush3.bf16.msra.mxu0 %v2261_v11  ;;  %1925 = vmatpush3.bf16.msra.mxu1 %v2269_v17  ;;  %v2295_v11 = vld [vmem:[#allocation5 + $0xc0] sm:$0xff]   ;;  %v2300_v17 = vld [vmem:[#allocation5 + $0xe8] sm:$0xff]  }
  0xa2   : > { %1906 = vmatprep.subr.bf16.mxu0 %v2545_v0  ;;  %1926 = vmatprep.subr.bf16.mxu1 %v2545_v0 }
  0xa5   : > { %1907 = vmatpush3.bf16.msra.mxu0 %v2262_v13  ;;  %1927 = vmatpush3.bf16.msra.mxu1 %v2270_v18  ;;  %v2296_v13 = vld [vmem:[#allocation5 + $0xc8] sm:$0xff]   ;;  %v2301_v18 = vld [vmem:[#allocation5 + $0xf0] sm:$0xff]  }
  0xa6   : > { %1932 = vmatprep.subr.bf16.mxu0 %v2545_v0  ;;  %1952 = vmatprep.subr.bf16.mxu1 %v2545_v0 }
  0xa8   : > { %1909 = vmatmul.mubr.bf16.vlgmr.msra.gmra.mrb[0].mxu0 %v258_v16  ;;  %v2299_v16 = vld [vmem:[#allocation5 + $0xe0] sm:$0xff]  }
  0xa9   : > { %1948 = vmatprep.mubr.msk.bf16.mxu0 %vm2546_vm0, %v2545_v0  ;;  %1933 = vmatpush3.bf16.msra.mxu0 %v2271_v19 }
  0xaa   : > { %1934 = vmatprep.subr.bf16.mxu0 %v2545_v0 }
  0xad   : > { %1935 = vmatpush3.bf16.msra.mxu0 %v2272_v20  ;;  %v2302_v20 = vld [vmem:[#allocation5 + $0xf8] sm:$0xff]  }
  0xae   : > { %1936 = vmatprep.subr.bf16.mxu0 %v2545_v0 }
  0xb1   : > { %1937 = vmatpush3.bf16.msra.mxu0 %v2273_v21 }
  0xb2   : > { %1938 = vmatprep.subr.bf16.mxu0 %v2545_v0 }
  0xb5   : > { %1939 = vmatpush3.bf16.msra.mxu0 %v2274_v22 }
  0xb6   : > { %1940 = vmatprep.subr.bf16.mxu0 %v2545_v0 }
  0xb9   : > { %1941 = vmatpush3.bf16.msra.mxu0 %v2275_v23 }
  0xba   : > { %1942 = vmatprep.subr.bf16.mxu0 %v2545_v0 }
  0xbd   : > { %1943 = vmatpush3.bf16.msra.mxu0 %v2276_v24  ;;  %v2303_v24 = vld [vmem:[#allocation5 + $0x200] sm:$0xff]  }
  0xbe   : > { %1944 = vmatprep.subr.bf16.mxu0 %v2545_v0 }
  0xc1   : > { %1945 = vmatpush3.bf16.msra.mxu0 %v2277_v25  ;;  %v2304_v25 = vld [vmem:[#allocation5 + $0x100] sm:$0xff]  }
  0xc2   : > { %1946 = vmatprep.subr.bf16.mxu0 %v2545_v0 }
  0xc5   : > { %1947 = vmatpush3.bf16.msra.mxu0 %v2278_v41  ;;  %v2318_v41 = vld [vmem:[#allocation5 + $0x138] sm:$0xff]  }
  0xc6   : > { %1972 = vmatprep.subr.bf16.mxu0 %v2545_v0 }
 0x17b   : > { %v361_v32 = vpop.f32.mrb[0].mxu0 }
 0x17c   : > { %v362_v33 = vadd.f32 %v361_v32, %v278_v30  ;;  %v1910_v35 = vpop.f32.mrb[1].mxu0  ;;  %v2307_v30 = vld [vmem:[#allocation5 + $0x210] sm:$0xff]   ;;  %v2309_v32 = vld [vmem:[#allocation5 + $0x218] sm:$0xff]  }
 0x17d   : > { %v364_v36 = vpop.f32.mrb[2].mxu0  ;;  %v2312_v35 = vld [vmem:[#allocation5 + $0x120] sm:$0xff]  }
 0x17e   : > { %v367_v37 = vmax.f32 %v362_v33, 0.0  ;;  %v1911_v38 = vpop.f32.mrb[3].mxu0  ;;  %v2310_v33 = vld [vmem:[#allocation5 + $0x118] sm:$0xff]   ;;  %v2313_v36 = vld [vmem:[#allocation5 + $0x228] sm:$0xff]  }
 0x17f   : > { %v2315_v38 = vld [vmem:[#allocation5 + $0x230] sm:$0xff]  }
 0x180   : > { %v372_v39 = vmul.f32 %v371_v34, %v367_v37  ;;  %v2311_v34 = vld [vmem:[#allocation5 + $0x220] sm:$0xff]   ;;  %v2314_v37 = vld [vmem:[#allocation5 + $0x128] sm:$0xff]  }
 0x182   : > { %v373_v40 = vpack.c.bf16 %v372_v39, %v372_v39  ;;  %v2316_v39 = vld [vmem:[#allocation5 + $0x130] sm:$0xff]  }
 0x184   : > { %1929 = vmatmul.mubr.bf16.vlgmr.msra.gmra.mrb[0].mxu1 %v373_v40  ;;  %v2317_v40 = vld [vmem:[#allocation5 + $0x238] sm:$0xff]  }
 0x185   : > { %1968 = vmatprep.mubr.msk.bf16.mxu1 %vm2546_vm0, %v2545_v0  ;;  %1953 = vmatpush3.bf16.msra.mxu1 %v2287_v42 }
 0x186   : > { %1954 = vmatprep.subr.bf16.mxu1 %v2545_v0 }
 0x189   : > { %1955 = vmatpush3.bf16.msra.mxu1 %v2288_v43 }
 0x18a   : > { %1956 = vmatprep.subr.bf16.mxu1 %v2545_v0 }
 0x18d   : > { %1957 = vmatpush3.bf16.msra.mxu1 %v2289_v44 }
 0x18e   : > { %1958 = vmatprep.subr.bf16.mxu1 %v2545_v0 }
 0x191   : > { %1959 = vmatpush3.bf16.msra.mxu1 %v2290_v45 }
 0x192   : > { %1960 = vmatprep.subr.bf16.mxu1 %v2545_v0 }
 0x195   : > { %1961 = vmatpush3.bf16.msra.mxu1 %v2291_v46 }
 0x196   : > { %1962 = vmatprep.subr.bf16.mxu1 %v2545_v0 }
 0x199   : > { %1963 = vmatpush3.bf16.msra.mxu1 %v2292_v47  ;;  %v825_v47 = vsub.s32 3, %v2815_v27 }
 0x19a   : > { %1964 = vmatprep.subr.bf16.mxu1 %v2545_v0 }
 0x19d   : > { %1965 = vmatpush3.bf16.msra.mxu1 %v2293_v48  ;;  %v826_v48 = vrot.slane %v2818_v29, %v825_v47  ;;  %v1468_v47 = vld [vmem:[#allocation8 + $0x8] sm:$0xff] }
 0x19e   : > { %1966 = vmatprep.subr.bf16.mxu1 %v2545_v0 }
 0x1a1   : > { %1967 = vmatpush3.bf16.msra.mxu1 %v2294_v3  ;;  %v2329_v3 = vld [vmem:[#allocation5 + $0x268] sm:$0xff]  }
 0x1a2   : > { %1992 = vmatprep.subr.bf16.mxu1 %v2545_v0 }
 0x257   : > { %v477_v51 = vpop.f32.mrb[0].mxu1 }
 0x258   : > { %v478_v52 = vadd.f32 %v477_v51, %v394_v50  ;;  %v1930_v53 = vpop.f32.mrb[1].mxu1 }
 0x259   : > { %v480_v54 = vpop.f32.mrb[2].mxu1 }
 0x25a   : > { %v483_v55 = vmax.f32 %v478_v52, 0.0  ;;  %v1931_v56 = vpop.f32.mrb[3].mxu1 }
 0x25b   : > { %v2320_v56 = vld [vmem:[#allocation5 + $0x140] sm:$0xff]  }
 0x25c   : > { %v484_v58 = vpack.c.bf16 %v483_v55, %v483_v55  ;;  %v2319_v55 = vld [vmem:[#allocation5 + $0x240] sm:$0xff]  }
 0x25e   : > { %1949 = vmatmul.mubr.bf16.vlgmr.msra.gmra.mrb[4].mxu0 %v484_v58 }
 0x25f   : > { %1973 = vmatpush3.bf16.msra.mxu0 %v2279_v57  ;;  %1988 = vmatprep.mubr.msk.bf16.mxu0 %vm2546_vm0, %v2545_v0 }
 0x260   : > { %1974 = vmatprep.subr.bf16.mxu0 %v2545_v0 }
 0x263   : > { %1975 = vmatpush3.bf16.msra.mxu0 %v2280_v59  ;;  %v2322_v59 = vld [vmem:[#allocation5 + $0x148] sm:$0xff]  }
 0x264   : > { %1976 = vmatprep.subr.bf16.mxu0 %v2545_v0 }
 0x267   : > { %1977 = vmatpush3.bf16.msra.mxu0 %v2281_v60  ;;  %v2323_v60 = vld [vmem:[#allocation5 + $0x250] sm:$0xff]  }
 0x268   : > { %1978 = vmatprep.subr.bf16.mxu0 %v2545_v0 }
 0x26b   : > { %1979 = vmatpush3.bf16.msra.mxu0 %v2282_v61  ;;  %v2324_v61 = vld [vmem:[#allocation5 + $0x150] sm:$0xff]  }
 0x26c   : > { %1980 = vmatprep.subr.bf16.mxu0 %v2545_v0 }
 0x26f   : > { %1981 = vmatpush3.bf16.msra.mxu0 %v2283_v62  ;;  %v2325_v62 = vld [vmem:[#allocation5 + $0x258] sm:$0xff]  }
 0x270   : > { %1982 = vmatprep.subr.bf16.mxu0 %v2545_v0 }
 0x273   : > { %1983 = vmatpush3.bf16.msra.mxu0 %v2284_v63  ;;  %v2326_v63 = vld [vmem:[#allocation5 + $0x158] sm:$0xff]  }
 0x274   : > { %1984 = vmatprep.subr.bf16.mxu0 %v2545_v0 }
 0x277   : > { %1985 = vmatpush3.bf16.msra.mxu0 %v2285_v1  ;;  %v2327_v1 = vld [vmem:[#allocation5 + $0x260] sm:$0xff]  }
 0x278   : > { %1986 = vmatprep.subr.bf16.mxu0 %v2545_v0 }
 0x27b   : > { %1987 = vmatpush3.bf16.msra.mxu0 %v2286_v2  ;;  %v2328_v2 = vld [vmem:[#allocation5 + $0x160] sm:$0xff]  }
 0x27c   : > { %2012 = vmatprep.subr.bf16.mxu0 %v2545_v0 }
 0x27e   : > { %1989 = vmatmul.mubr.bf16.vlgmr.msra.gmra.mrb[8].mxu0 %v484_v58  ;;  %v2321_v58 = vld [vmem:[#allocation5 + $0x248] sm:$0xff]  }
 0x27f   : > { %2028 = vmatprep.mubr.msk.bf16.mxu0 %vm2546_vm0, %v2545_v0  ;;  %2013 = vmatpush3.bf16.msra.mxu0 %v2303_v24  ;;  %v2336_v24 = vld [vmem:[#allocation5 + $0x288] sm:$0xff]  }
 0x280   : > { %2014 = vmatprep.subr.bf16.mxu0 %v2545_v0 }
 0x283   : > { %2015 = vmatpush3.bf16.msra.mxu0 %v2305_v26  ;;  %v2338_v26 = vld [vmem:[#allocation5 + $0x298] sm:$0xff]  }
 0x284   : > { %2016 = vmatprep.subr.bf16.mxu0 %v2545_v0 }
 0x287   : > { %2017 = vmatpush3.bf16.msra.mxu0 %v2307_v30  ;;  %v2340_v30 = vld [vmem:[#allocation5 + $0x2a8] sm:$0xff]  }
 0x288   : > { %2018 = vmatprep.subr.bf16.mxu0 %v2545_v0 }
 0x28b   : > { %2019 = vmatpush3.bf16.msra.mxu0 %v2309_v32  ;;  %v2342_v32 = vld [vmem:[#allocation5 + $0x2b8] sm:$0xff]  }
 0x28c   : > { %2020 = vmatprep.subr.bf16.mxu0 %v2545_v0 }
 0x28f   : > { %2021 = vmatpush3.bf16.msra.mxu0 %v2311_v34 }
 0x290   : > { %2022 = vmatprep.subr.bf16.mxu0 %v2545_v0 }
 0x293   : > { %2023 = vmatpush3.bf16.msra.mxu0 %v2313_v36 }
 0x294   : > { %2024 = vmatprep.subr.bf16.mxu0 %v2545_v0 }
 0x297   : > { %2025 = vmatpush3.bf16.msra.mxu0 %v2315_v38 }
 0x298   : > { %2026 = vmatprep.subr.bf16.mxu0 %v2545_v0 }
 0x29b   : > { %2027 = vmatpush3.bf16.msra.mxu0 %v2317_v40 }
 0x29c   : > { %2052 = vmatprep.subr.bf16.mxu0 %v2545_v0 }
 0x331   : > { %v605_v5 = vpop.f32.mrb[4].mxu0 }
 0x332   : > { %v606_v6 = vadd.f32 %v605_v5, %v522_v4  ;;  %v1950_v7 = vpop.f32.mrb[5].mxu0  ;;  %v2330_v4 = vld [vmem:[#allocation5 + $0x168] sm:$0xff]   ;;  %v2331_v5 = vld [vmem:[#allocation5 + $0x270] sm:$0xff]  }
 0x333   : > { %v608_v8 = vpop.f32.mrb[6].mxu0  ;;  %v2333_v7 = vld [vmem:[#allocation5 + $0x278] sm:$0xff]  }
 0x334   : > { %v611_v9 = vmax.f32 %v606_v6, 0.0  ;;  %v1951_v10 = vpop.f32.mrb[7].mxu0  ;;  %v2332_v6 = vld [vmem:[#allocation5 + $0x170] sm:$0xff]   ;;  %v2334_v8 = vld [vmem:[#allocation5 + $0x178] sm:$0xff]  }
 0x336   : > { %v612_v12 = vpack.c.bf16 %v611_v9, %v611_v9  ;;  %v1042_v9 = vsub.s32 4, %v2815_v27 }
 0x338   : > { %1969 = vmatmul.mubr.bf16.vlgmr.msra.gmra.mrb[4].mxu1 %v612_v12  ;;  %v1043_v10 = vrot.slane %v2818_v29, %v1042_v9 }
 0x339   : > { %1993 = vmatpush3.bf16.msra.mxu1 %v2295_v11  ;;  %2008 = vmatprep.mubr.msk.bf16.mxu1 %vm2546_vm0, %v2545_v0 }
 0x33a   : > { %1994 = vmatprep.subr.bf16.mxu1 %v2545_v0 }
 0x33d   : > { %1995 = vmatpush3.bf16.msra.mxu1 %v2296_v13 }
 0x33e   : > { %1996 = vmatprep.subr.bf16.mxu1 %v2545_v0 }
 0x341   : > { %1997 = vmatpush3.bf16.msra.mxu1 %v2297_v14 }
 0x342   : > { %1998 = vmatprep.subr.bf16.mxu1 %v2545_v0 }
 0x345   : > { %1999 = vmatpush3.bf16.msra.mxu1 %v2298_v15 }
 0x346   : > { %2000 = vmatprep.subr.bf16.mxu1 %v2545_v0 }
 0x349   : > { %2001 = vmatpush3.bf16.msra.mxu1 %v2299_v16 }
 0x34a   : > { %2002 = vmatprep.subr.bf16.mxu1 %v2545_v0 }
 0x34d   : > { %2003 = vmatpush3.bf16.msra.mxu1 %v2300_v17 }
 0x34e   : > { %2004 = vmatprep.subr.bf16.mxu1 %v2545_v0 }
 0x351   : > { %v800_v19 = vpop.f32.mrb[8].mxu0  ;;  %2005 = vmatpush3.bf16.msra.mxu1 %v2301_v18 }
 0x352   : > { %v1990_v21 = vpop.f32.mrb[9].mxu0  ;;  %2006 = vmatprep.subr.bf16.mxu1 %v2545_v0 }
 0x353   : > { %v803_v22 = vpop.f32.mrb[10].mxu0 }
 0x354   : > { %v1991_v23 = vpop.f32.mrb[11].mxu0  ;;  %v2335_v22 = vld [vmem:[#allocation5 + $0x280] sm:$0xff]  }
 0x355   : > { %2007 = vmatpush3.bf16.msra.mxu1 %v2302_v20 }
 0x356   : > { %2032 = vmatprep.subr.bf16.mxu1 %v2545_v0 }
 0x358   : > { %2009 = vmatmul.mubr.bf16.vlgmr.msra.gmra.mrb[8].mxu1 %v612_v12 }
 0x359   : > { %2048 = vmatprep.mubr.msk.bf16.mxu1 %vm2546_vm0, %v2545_v0  ;;  %2033 = vmatpush3.bf16.msra.mxu1 %v2304_v25  ;;  %v2337_v25 = vld [vmem:[#allocation5 + $0x290] sm:$0xff]  }
 0x35a   : > { %2034 = vmatprep.subr.bf16.mxu1 %v2545_v0 }
 0x35d   : > { %2035 = vmatpush3.bf16.msra.mxu1 %v2306_v28  ;;  %v2339_v28 = vld [vmem:[#allocation5 + $0x2a0] sm:$0xff]  }
 0x35e   : > { %2036 = vmatprep.subr.bf16.mxu1 %v2545_v0 }
 0x361   : > { %2037 = vmatpush3.bf16.msra.mxu1 %v2308_v31  ;;  %v2341_v31 = vld [vmem:[#allocation5 + $0x2b0] sm:$0xff]  }
 0x362   : > { %2038 = vmatprep.subr.bf16.mxu1 %v2545_v0 }
 0x365   : > { %2039 = vmatpush3.bf16.msra.mxu1 %v2310_v33  ;;  %v1259_v33 = vsub.s32 5, %v2815_v27 }
 0x366   : > { %2040 = vmatprep.subr.bf16.mxu1 %v2545_v0 }
 0x367   : > { %v1260_v34 = vrot.slane %v2818_v29, %v1259_v33 }
 0x369   : > { %2041 = vmatpush3.bf16.msra.mxu1 %v2312_v35 }
 0x36a   : > { %2042 = vmatprep.subr.bf16.mxu1 %v2545_v0 }
 0x36d   : > { %2043 = vmatpush3.bf16.msra.mxu1 %v2314_v37 }
 0x36e   : > { %2044 = vmatprep.subr.bf16.mxu1 %v2545_v0 }
 0x371   : > { %2045 = vmatpush3.bf16.msra.mxu1 %v2316_v39 }
 0x372   : > { %2046 = vmatprep.subr.bf16.mxu1 %v2545_v0 }
 0x375   : > { %2047 = vmatpush3.bf16.msra.mxu1 %v2318_v41 }
 0x376   : > { %2072 = vmatprep.subr.bf16.mxu1 %v2545_v0 }
 0x40b   : > { %v712_v42 = vpop.f32.mrb[4].mxu1 }
 0x40c   : > { %v2880_v43 = vadd.f32 %v800_v19, %v712_v42  ;;  %v1970_v44 = vpop.f32.mrb[5].mxu1 }
 0x40d   : > { %v715_v45 = vpop.f32.mrb[6].mxu1 }
 0x40e   : > { %v1971_v46 = vpop.f32.mrb[7].mxu1 }
 0x42b   : > { %v909_v49 = vpop.f32.mrb[8].mxu1 }
 0x42c   : > { %v910_v50 = vadd.f32 %v909_v49, %v826_v48  ;;  %v2010_v51 = vpop.f32.mrb[9].mxu1  ;;  %v1469_v48 = vld [vmem:[#allocation8 + $0x10] sm:$0xff]  ;;  %v2547_v49 = vmov 0.0|0.0  }
 0x42d   : > { %v912_v52 = vpop.f32.mrb[10].mxu1  ;;  %v1470_v51 = vld [vmem:[#allocation8 + $0x18] sm:$0xff] }
 0x42e   : > { %v915_v53 = vmax.f32 %v910_v50, 0.0  ;;  %v2011_v54 = vpop.f32.mrb[11].mxu1  ;;  %v2151_v52 = vpack.c.bf16 %v1470_v51, %v1469_v48 }
 0x42f   : > { %v1472_v54 = vld [vmem:[#allocation8 + $0x28] sm:$0xff] }
 0x430   : > { %v916_v57 = vpack.c.bf16 %v915_v53, %v915_v53  ;;  %v1471_v53 = vld [vmem:[#allocation8 + $0x20] sm:$0xff] }
 0x432   : > { %2029 = vmatmul.mubr.bf16.vlgmr.msra.gmra.mrb[12].mxu0 %v916_v57  ;;  %2049 = vmatmul.mubr.bf16.vlgmr.msra.gmra.mrb[12].mxu1 %v916_v57  ;;  %v1474_v57 = vld [vmem:[#allocation8 + $0x38] sm:$0xff] }
 0x433   : > { %2053 = vmatpush3.bf16.msra.mxu0 %v2319_v55  ;;  %2073 = vmatpush3.bf16.msra.mxu1 %v2320_v56  ;;  %v2154_v55 = vpack.c.bf16 %v1472_v54, %v1471_v53  ;;  %v1473_v56 = vld [vmem:[#allocation8 + $0x30] sm:$0xff] }
 0x434   : > { %2054 = vmatprep.subr.bf16.mxu0 %v2545_v0  ;;  %2074 = vmatprep.subr.bf16.mxu1 %v2545_v0 }
 0x435   : > { %2068 = vmatprep.mubr.msk.bf16.mxu0 %vm2546_vm0, %v2545_v0  ;;  %2088 = vmatprep.mubr.msk.bf16.mxu1 %vm2546_vm0, %v2545_v0 }
 0x437   : > { %2055 = vmatpush3.bf16.msra.mxu0 %v2321_v58  ;;  %2075 = vmatpush3.bf16.msra.mxu1 %v2322_v59  ;;  %v2157_v58 = vpack.c.bf16 %v1474_v57, %v1473_v56  ;;  %v1459_v59 = vsub.s32 6, %v2815_v27  ;;  %v1480_v27 = vld [vmem:[#allocation8 + $0x68] sm:$0xff] }
 0x438   : > { %2056 = vmatprep.subr.bf16.mxu0 %v2545_v0  ;;  %2076 = vmatprep.subr.bf16.mxu1 %v2545_v0 }
 0x43b   : > { %2057 = vmatpush3.bf16.msra.mxu0 %v2323_v60  ;;  %2077 = vmatpush3.bf16.msra.mxu1 %v2324_v61  ;;  %v1460_v60 = vrot.slane %v2818_v29, %v1459_v59 }
 0x43c   : > { %2058 = vmatprep.subr.bf16.mxu0 %v2545_v0  ;;  %2078 = vmatprep.subr.bf16.mxu1 %v2545_v0 }
 0x43f   : > { %2059 = vmatpush3.bf16.msra.mxu0 %v2325_v62  ;;  %2079 = vmatpush3.bf16.msra.mxu1 %v2326_v63 }
 0x440   : > { %2060 = vmatprep.subr.bf16.mxu0 %v2545_v0  ;;  %2080 = vmatprep.subr.bf16.mxu1 %v2545_v0 }
 0x443   : > { %2061 = vmatpush3.bf16.msra.mxu0 %v2327_v1  ;;  %2081 = vmatpush3.bf16.msra.mxu1 %v2328_v2 }
 0x444   : > { %2062 = vmatprep.subr.bf16.mxu0 %v2545_v0  ;;  %2082 = vmatprep.subr.bf16.mxu1 %v2545_v0 }
 0x447   : > { %2063 = vmatpush3.bf16.msra.mxu0 %v2329_v3  ;;  %2083 = vmatpush3.bf16.msra.mxu1 %v2330_v4  ;;  %v1475_v4 = vld [vmem:[#allocation8 + $0x40] sm:$0xff] }
 0x448   : > { %2064 = vmatprep.subr.bf16.mxu0 %v2545_v0  ;;  %2084 = vmatprep.subr.bf16.mxu1 %v2545_v0 }
 0x44b   : > { %2065 = vmatpush3.bf16.msra.mxu0 %v2331_v5  ;;  %2085 = vmatpush3.bf16.msra.mxu1 %v2332_v6  ;;  %v1476_v5 = vld [vmem:[#allocation8 + $0x48] sm:$0xff] }
 0x44c   : > { %2066 = vmatprep.subr.bf16.mxu0 %v2545_v0  ;;  %2086 = vmatprep.subr.bf16.mxu1 %v2545_v0  ;;  %v2160_v6 = vpack.c.bf16 %v1476_v5, %v1475_v4 }
 0x44f   : > { %2067 = vmatpush3.bf16.msra.mxu0 %v2333_v7  ;;  %2087 = vmatpush3.bf16.msra.mxu1 %v2334_v8  ;;  %v1477_v7 = vld [vmem:[#allocation8 + $0x50] sm:$0xff]  ;;  %v1478_v8 = vld [vmem:[#allocation8 + $0x58] sm:$0xff] }
 0x450   : > { %2092 = vmatprep.subr.bf16.mxu0 %v2545_v0  ;;  %2147 = vmatprep.subr.bf16.mxu1 %v2547_v49  ;;  %v2163_v9 = vpack.c.bf16 %v1478_v8, %v1477_v7 }
 0x505   : > { %v1016_v11 = vpop.f32.mrb[12].mxu0  ;;  %v1126_v12 = vpop.f32.mrb[12].mxu1 }
 0x506   : > { %v1022_v13 = vadd.f32 %v1016_v11, %v2880_v43  ;;  %v1127_v14 = vadd.f32 %v1126_v12, %v1043_v10  ;;  %v2030_v15 = vpop.f32.mrb[13].mxu0  ;;  %v2050_v16 = vpop.f32.mrb[13].mxu1  ;;  %v1479_v10 = vld [vmem:[#allocation8 + $0x60] sm:$0xff]  ;;  %v1481_v11 = vld [vmem:[#allocation8 + $0x70] sm:$0xff]  ;;  %v1482_v12 = vld [vmem:[#allocation8 + $0x78] sm:$0xff] }
 0x507   : > { %v1019_v17 = vpop.f32.mrb[14].mxu0  ;;  %v1129_v18 = vpop.f32.mrb[14].mxu1  ;;  %v2166_v29 = vpack.c.bf16 %v1480_v27, %v1479_v10 }
 0x508   : > { %v1132_v19 = vmax.f32 %v1127_v14, 0.0  ;;  %v2031_v20 = vpop.f32.mrb[15].mxu0  ;;  %v2051_v21 = vpop.f32.mrb[15].mxu1 }
 0x50a   : > { %v1133_v23 = vpack.c.bf16 %v1132_v19, %v1132_v19 }
 0x50c   : > { %2069 = vmatmul.mubr.bf16.vlgmr.msra.gmra.mrb[16].mxu0 %v1133_v23  ;;  %2089 = vmatmul.mubr.bf16.vlgmr.msra.gmra.mrb[16].mxu1 %v1133_v23 }
 0x50d   : > { %2093 = vmatpush3.bf16.msra.mxu0 %v2335_v22  ;;  %2108 = vmatprep.mubr.msk.bf16.mxu0 %vm2546_vm0, %v2545_v0 }
 0x50e   : > { %2094 = vmatprep.subr.bf16.mxu0 %v2545_v0  ;;  %2144 = vmatprep.mubr.msk.f32.mxu1 %vm2546_vm0, %v2545_v0 }
 0x511   : > { %2095 = vmatpush3.bf16.msra.mxu0 %v2336_v24 }
 0x512   : > { %2096 = vmatprep.subr.bf16.mxu0 %v2545_v0 }
 0x515   : > { %2097 = vmatpush3.bf16.msra.mxu0 %v2337_v25 }
 0x516   : > { %2098 = vmatprep.subr.bf16.mxu0 %v2545_v0 }
 0x519   : > { %2099 = vmatpush3.bf16.msra.mxu0 %v2338_v26 }
 0x51a   : > { %2100 = vmatprep.subr.bf16.mxu0 %v2545_v0 }
 0x51d   : > { %2101 = vmatpush3.bf16.msra.mxu0 %v2339_v28 }
 0x51e   : > { %2102 = vmatprep.subr.bf16.mxu0 %v2545_v0 }
 0x521   : > { %2103 = vmatpush3.bf16.msra.mxu0 %v2340_v30 }
 0x522   : > { %2104 = vmatprep.subr.bf16.mxu0 %v2545_v0 }
 0x525   : > { %2105 = vmatpush3.bf16.msra.mxu0 %v2341_v31 }
 0x526   : > { %2106 = vmatprep.subr.bf16.mxu0 %v2545_v0  ;;  %v1467_v0 = vld [vmem:[#allocation8] sm:$0xff] }
 0x527   : > { %v2148_v50 = vpack.c.bf16 %v1468_v47, %v1467_v0 }
 0x529   : > { %2107 = vmatpush3.bf16.msra.mxu0 %v2342_v32  ;;  %2149 = vmatpush3.bf16.msra.mxu1 %v2148_v50 }
 0x52a   : > { %2150 = vmatprep.subr.bf16.mxu1 %v2547_v49 }
 0x52d   : > { %2152 = vmatpush3.bf16.msra.mxu1 %v2151_v52 }
 0x52e   : > { %2153 = vmatprep.subr.bf16.mxu1 %v2547_v49 }
 0x531   : > { %2155 = vmatpush3.bf16.msra.mxu1 %v2154_v55 }
 0x532   : > { %2156 = vmatprep.subr.bf16.mxu1 %v2547_v49 }
 0x535   : > { %2158 = vmatpush3.bf16.msra.mxu1 %v2157_v58 }
 0x536   : > { %2159 = vmatprep.subr.bf16.mxu1 %v2547_v49 }
 0x539   : > { %2161 = vmatpush3.bf16.msra.mxu1 %v2160_v6 }
 0x53a   : > { %2162 = vmatprep.subr.bf16.mxu1 %v2547_v49 }
 0x53d   : > { %2164 = vmatpush3.bf16.msra.mxu1 %v2163_v9 }
 0x53e   : > { %2165 = vmatprep.subr.bf16.mxu1 %v2547_v49 }
 0x541   : > { %2167 = vmatpush3.bf16.msra.mxu1 %v2166_v29 }
 0x542   : > { %2168 = vmatprep.subr.bf16.mxu1 %v2547_v49 }
 0x5df   : > { %v1233_v35 = vpop.f32.mrb[16].mxu0  ;;  %v1343_v36 = vpop.f32.mrb[16].mxu1 }
 0x5e0   : > { %v1239_v37 = vadd.f32 %v1233_v35, %v1022_v13  ;;  %v1344_v38 = vadd.f32 %v1343_v36, %v1260_v34  ;;  %v2070_v39 = vpop.f32.mrb[17].mxu0  ;;  %v2090_v40 = vpop.f32.mrb[17].mxu1  ;;  %v2169_v13 = vpack.c.bf16 %v1482_v12, %v1481_v11 }
 0x5e1   : > { %v1236_v41 = vpop.f32.mrb[18].mxu0  ;;  %v1346_v42 = vpop.f32.mrb[18].mxu1 }
 0x5e2   : > { %v1349_v43 = vmax.f32 %v1344_v38, 0.0  ;;  %v2071_v44 = vpop.f32.mrb[19].mxu0  ;;  %v2091_v45 = vpop.f32.mrb[19].mxu1  ;;  %2170 = vmatpush3.bf16.msra.mxu1 %v2169_v13 }
 0x5e4   : > { %v1350_v46 = vpack.c.bf16 %v1349_v43, %v1349_v43 }
 0x5e6   : > { %2109 = vmatmul.mubr.bf16.vlgmr.msra.gmra.mrb[20].mxu0 %v1350_v46 }
 0x6b9   : > { %v1450_v61 = vpop.f32.mrb[20].mxu0 }
 0x6ba   : > { %v1456_v62 = vadd.f32 %v1450_v61, %v1239_v37  ;;  %v2110_v63 = vpop.f32.mrb[21].mxu0 }
 0x6bb   : > { %v1453_v1 = vpop.f32.mrb[22].mxu0 }
 0x6bc   : > { %v2111_v2 = vpop.f32.mrb[23].mxu0  ;;  %v1461_v3 = vadd.f32 %v1460_v60, %v1456_v62 }
 0x6be   : > { %1462 = vmax.xlane.f32.xlu0 %v1461_v3 }
 0x74b   : > { %v1463_v14 = vpop.xlane.xlu0 %1462 }
 0x74c   : > { %v1464_v15 = vsub.f32 %v1461_v3, %v1463_v14 }
 0x74e   : > { %v1465_v16 = vmul.f32 1.442695, %v1464_v15 }
 0x750   : > { %2343 = vpow2.f32 %v1465_v16 }
 0x75a   : > { %v2344_v17 = vpop.eup %2343 }
 0x75b   : > { %2145 = vmatmul.mubr.f32.vlgmr.msra.gmra.mrb[20].mxu1 %v2344_v17 }
 0x82e   : > { %v1549_v18 = vpop.f32.mrb[20].mxu1 }
 0x82f   : > { %v1553_v19 = vmax.f32 %v1549_v18, 1e-30  ;;  %v2146_v20 = vpop.f32.mrb[21].mxu1 }
 0x831   : > { %2345 = vrcp.f32 %v1553_v19 }
 0x83b   : > { %v2346_v21 = vpop.eup %2345 }
 0x83c   : > { %v1555_v22 = vmul.f32 %v2346_v21, %v2344_v17 }
 0x83e   : > { %1556 = vst [vmem:[%s254_s23] sm:$0xff] %v1555_v22 }
 0x83f   : > { %2474 = shalt.err (!%p2471_p4)
}
 0x840   : > { %s2475_s30 = scalar_lea.hbm %s2927_s28, 128  ;;  %s2479_s5 = scalar_lea.hbm %s2974_s4, 512 }
 0x841   : > { %p2476_p13 = scmp.ne.s32.totalorder %s2927_s28, %s2475_s30  ;;  %p2480_p8 = scmp.lt.u32.totalorder %s2927_s28, %s2974_s4 }
 0x842   : > { %p2481_p12 = scmp.lt.u32.totalorder %s2479_s5, %s2475_s30  ;;  %p2483_p0 = scmp.lt.u32.totalorder %s2475_s30, %s2927_s28 }
 0x843   : > { %p2477_p9 = pnand %p2476_p13, %p2718_p5 }
 0x844   : > { %p2482_p6 = por %p2481_p12, %p2480_p8 }
 0x845   : > { %p2478_p10 = pneg %p2477_p9 }
 0x846   : > { %p2484_p3 = por %p2483_p0, %p2482_p6 }
 0x848   : > { %p2485_p7 = pnand %p2484_p3, %p2478_p10 }
 0x84a   : > { %2488 = shalt.err (!%p2485_p7)
}
 0x84b   : > { %2185 = dma.vmem_to_hbm [thread:$0]  (%p2718_p5), %s2929_s29, 128, %s2927_s28, %s1558_s25  }
 0x84c PF: > { %p2212_p11 = scmp.ge.s32.totalorder %s2535_s18, 2  ;;  %s1583_s9 = sand.u32 1, %s2523_s15  }
 0x84d   : > { %p2992_p2 = scmp.ne.s32.totalorder %s2979_s22, 0  ;;  %s1584_s21 = scalar_lea.sflag [#allocation4], %s1583_s9 }
 0x84f   : > { %p2202_p1 = pnand %p2212_p11, %p2992_p2 }
 0x851   : > { %2518 = dma.done.wait (!%p2202_p1), %s1584_s21, 128  }
 0x852   : > { %2520 = vsyncadd (!%p2202_p1), %s1584_s21, 4294967168  ;;  %p19_p4 = scmp.ge.s32.totalorder %s2704_s11, 6   ;;  %s2993_s15 = smov %s2527_s16 }
 0x853   : > { %s2994_s16 = smov %s2531_s17  ;;  %s2995_s17 = smov %s2714_s13 }
 0x854   : > { %s2996_s18 = smov %s2704_s11  ;;  %21 = sbr.rel (!%p19_p4) target bundleno = 7 (0x7), region = 103 }
 0x85b   :  { %1589 = vsyncpa [#allocation3], 1 }
 0x85c   :  { %1591 = vsyncpa [#allocation3 + $0x1], 1 }
 0x85d   :  { %1592 = vsyncpa [#allocation6], 1 }
 0x85e   :  { %1593 = vsyncpa [#allocation9], 1 }
 0x85f   :  { %1594 = vsyncpa [#allocation4], 1 }
 0x860   :  { %1596 = vsyncpa [#allocation4 + $0x1], 1 }

</bundles_post_ra>
